<compile_context>
chip_gen: v7x
topology: tpu7x:2x2x1
jax: 0.10.0
libtpu: 0.0.40
codegen_flags: <defaults>
</compile_context>

<pallas_src>
import jax
import jax.numpy as jnp
from jax.experimental import pallas as pl
from jax.experimental.pallas import tpu as pltpu

_NEG_BIG = -1e30  # pushes padded classes out of max/softmax without inf arithmetic


def _head_kernel(x_ref, w_ref, b_ref, lbl_ref, logits_ref, loss_ref):
    # x_ref: (TILE_N, HW, C) channels-last block.
    x = x_ref[...]
    hw = x.shape[1]
    # AdaptiveAvgPool2d((1,1)) + view(N, -1): mean over the spatial (sublane) axis.
    pooled = jnp.sum(x, axis=1) * (1.0 / hw)                               # (TILE_N, C)

    # fc: logits = pooled @ W + b  (W is (C, K_pad) = torch weight.T, zero-padded)
    logits = jnp.dot(pooled, w_ref[...],
                     preferred_element_type=jnp.float32) + b_ref[...]      # (TILE_N, K_pad)
    logits_ref[...] = logits

    # per-row softmax cross-entropy: logsumexp - logit[label]
    m = jnp.max(logits, axis=1, keepdims=True)
    lse = m + jnp.log(jnp.sum(jnp.exp(logits - m), axis=1, keepdims=True))
    tn, kp = logits.shape
    cls_iota = jax.lax.broadcasted_iota(jnp.int32, (tn, kp), 1)
    picked = jnp.sum(jnp.where(cls_iota == lbl_ref[...], logits, 0.0),
                     axis=1, keepdims=True)                                # (TILE_N, 1)
    loss_ref[...] = lse - picked


def _choose_tile_n(n, hw, c, budget_bytes=16 * 1024 * 1024):
    """Largest batch tile whose double-buffered x block fits a conservative VMEM budget."""
    per_row_bytes = hw * c * 4
    t = max(1, budget_bytes // (2 * per_row_bytes))
    t = min(t, 128)
    if t >= n:
        return n
    # keep the (TILE_N, K_pad) / (TILE_N, 1) block sublane dim 8-aligned
    return min(max(8, (t // 8) * 8), n)


def linear_cls_head_forward(x, w, b, gt_label, topk=(1,)):
    """Mirrors LinearClsHead.forward(x, gt_label) -> losses dict.

    x: (N, C, H, W) f32,  w: (C, K) = torch fc.weight.T,  b: (K,),  gt_label: (N,) int.
    """
    N, C, H, W = x.shape
    K = w.shape[1]
    HW = H * W

    # Channels-last: C on the lane axis, H*W on sublanes (layout plumbing in XLA).
    x_cl = jnp.transpose(x, (0, 2, 3, 1)).reshape(N, HW, C)

    # Pad classes to a lane-dense multiple of 128.
    K_pad = max(128, ((K + 127) // 128) * 128)
    w_pad = jnp.pad(w, ((0, 0), (0, K_pad - K)))
    b_pad = jnp.pad(b.reshape(1, K), ((0, 0), (0, K_pad - K)),
                    constant_values=_NEG_BIG)
    lbl2 = gt_label.astype(jnp.int32).reshape(N, 1)

    TILE_N = _choose_tile_n(N, HW, C)
    grid = (pl.cdiv(N, TILE_N),)

    logits_pad, per_row_loss = pl.pallas_call(
        _head_kernel,
        out_shape=(
            jax.ShapeDtypeStruct((N, K_pad), jnp.float32),
            jax.ShapeDtypeStruct((N, 1), jnp.float32),
        ),
        grid_spec=pltpu.PrefetchScalarGridSpec(
            num_scalar_prefetch=0,
            grid=grid,
            in_specs=[
                pl.BlockSpec((TILE_N, HW, C), lambda i: (i, 0, 0)),   # streamed x blocks
                pl.BlockSpec((C, K_pad), lambda i: (0, 0)),           # resident weights
                pl.BlockSpec((1, K_pad), lambda i: (0, 0)),           # resident bias
                pl.BlockSpec((TILE_N, 1), lambda i: (i, 0)),          # labels per tile
            ],
            out_specs=[
                pl.BlockSpec((TILE_N, K_pad), lambda i: (i, 0)),      # lane-dense logits
                pl.BlockSpec((TILE_N, 1), lambda i: (i, 0)),          # per-row CE loss
            ],
        ),
        compiler_params=pltpu.CompilerParams(
            dimension_semantics=("parallel",),       # rows independent -> megacore on v7x
            vmem_limit_bytes=48 * 1024 * 1024,
        ),
    )(x_cl, w_pad, b_pad, lbl2)

    logits = logits_pad[:, :K]
    losses = {"loss": jnp.mean(per_row_loss), "accuracy": {}}

    # Accuracy(topk) helper — plain-JAX glue on the kernel's logits (percentage).
    kmax = max(topk)
    _, top_idx = jax.lax.top_k(logits, kmax)                              # (N, kmax)
    for k_val in topk:
        hit = jnp.any(top_idx[:, :k_val] == gt_label[:, None], axis=1)
        losses["accuracy"][f"top-{k_val}"] = jnp.mean(hit.astype(jnp.float32)) * 100.0
    return losses


if __name__ == "__main__":
    # Small shapes consistent with the module's forward: NCHW feature map.
    N, C, H, W = 2, 4, 16, 16
    num_classes = 8

    key = jax.random.PRNGKey(0)
    kx, kw, kl = jax.random.split(key, 3)

    x = jax.random.normal(kx, (N, C, H, W), dtype=jnp.float32)
    # init_weights(): normal_init(fc, mean=0, std=0.01, bias=0)
    w = jax.random.normal(kw, (C, num_classes), dtype=jnp.float32) * 0.01
    b = jnp.zeros((num_classes,), dtype=jnp.float32)
    gt_label = jax.random.randint(kl, (N,), 0, num_classes, dtype=jnp.int32)

    losses = linear_cls_head_forward(x, w, b, gt_label, topk=(1,))
    jax.block_until_ready(losses)

    # Pure-JAX reference check of the cross-entropy + accuracy path.
    pooled_ref = jnp.mean(x, axis=(2, 3))
    logits_ref = pooled_ref @ w + b
    lse_ref = jax.scipy.special.logsumexp(logits_ref, axis=1)
    loss_ref = jnp.mean(lse_ref - logits_ref[jnp.arange(N), gt_label])
    acc_ref = jnp.mean(
        (jnp.argmax(logits_ref, axis=1) == gt_label).astype(jnp.float32)) * 100.0

    assert jnp.allclose(losses["loss"], loss_ref, atol=1e-5, rtol=1e-5)
    assert jnp.allclose(losses["accuracy"]["top-1"], acc_ref, atol=1e-5)

    print("KERNEL_OK")
</pallas_src>

<mosaic_0001>
module attributes {stable_mosaic.version = 11 : i64} {
  func.func @_head_kernel(%arg0: i32, %arg1: memref<2x256x4xf32, #tpu.memory_space<vmem>>, %arg2: memref<4x128xf32, #tpu.memory_space<vmem>>, %arg3: memref<1x128xf32, #tpu.memory_space<vmem>>, %arg4: memref<2x1xi32, #tpu.memory_space<vmem>>, %arg5: memref<2x128xf32, #tpu.memory_space<vmem>>, %arg6: memref<2x1xf32, #tpu.memory_space<vmem>>) attributes {dimension_semantics = [#tpu.dimension_semantics<parallel>], iteration_bounds = array<i64: 1>, scalar_prefetch = 0 : i64, scratch_operands = 0 : i64, tpu.core_type = #tpu.core_type<tc>, window_params = [{transform_indices = @transform_0, window_bounds = array<i64: 2, 256, 4>}, {pipeline_mode = #tpu.pipeline_mode<synchronous>, transform_indices = @transform_1, window_bounds = array<i64: 4, 128>}, {pipeline_mode = #tpu.pipeline_mode<synchronous>, transform_indices = @transform_2, window_bounds = array<i64: 1, 128>}, {transform_indices = @transform_3, window_bounds = array<i64: 2, 1>}, {transform_indices = @transform_4, window_bounds = array<i64: 2, 128>}, {transform_indices = @transform_5, window_bounds = array<i64: 2, 1>}]} {
    %c0 = arith.constant 0 : index
    %c0_0 = arith.constant 0 : index
    %c0_1 = arith.constant 0 : index
    %0 = vector.load %arg1[%c0, %c0_0, %c0_1] : memref<2x256x4xf32, #tpu.memory_space<vmem>>, vector<2x256x4xf32>
    %cst = arith.constant dense<0.000000e+00> : vector<2x4xf32>
    %1 = vector.multi_reduction <add>, %0, %cst [1] : vector<2x256x4xf32> to vector<2x4xf32>
    %cst_2 = arith.constant 3.906250e-03 : f32
    %2 = vector.broadcast %cst_2 : f32 to vector<2x4xf32>
    %3 = arith.mulf %1, %2 : vector<2x4xf32>
    %c0_3 = arith.constant 0 : index
    %c0_4 = arith.constant 0 : index
    %4 = vector.load %arg2[%c0_3, %c0_4] : memref<4x128xf32, #tpu.memory_space<vmem>>, vector<4x128xf32>
    %cst_5 = arith.constant dense<0.000000e+00> : vector<2x128xf32>
    %5 = tpu.matmul %3, %4, %cst_5 {dimension_numbers = #tpu.dot_dimension_numbers<[1], [0], [0], [1], [0, 0, 1, 1], [], []>} : vector<2x4xf32>, vector<4x128xf32>, vector<2x128xf32> -> vector<2x128xf32>
    %c0_6 = arith.constant 0 : index
    %c0_7 = arith.constant 0 : index
    %6 = vector.load %arg3[%c0_6, %c0_7] : memref<1x128xf32, #tpu.memory_space<vmem>>, vector<1x128xf32>
    %7 = vector.broadcast %6 : vector<1x128xf32> to vector<2x128xf32>
    %8 = arith.addf %5, %7 : vector<2x128xf32>
    %c0_8 = arith.constant 0 : index
    %c0_9 = arith.constant 0 : index
    %9 = vector.load %arg5[%c0_8, %c0_9] : memref<2x128xf32, #tpu.memory_space<vmem>>, vector<2x128xf32>
    tpu.vector_store %arg5[%c0_8, %c0_9], %8 {strides = array<i32>} : memref<2x128xf32, #tpu.memory_space<vmem>>, vector<2x128xf32>,
    %cst_10 = arith.constant dense<0xFF800000> : vector<2xf32>
    %10 = vector.multi_reduction <maximumf>, %8, %cst_10 [1] : vector<2x128xf32> to vector<2xf32>
    %11 = vector.shape_cast %10 : vector<2xf32> to vector<2x1xf32>
    %12 = vector.broadcast %11 : vector<2x1xf32> to vector<2x128xf32>
    %13 = arith.subf %8, %12 : vector<2x128xf32>
    %14 = math.exp %13 : vector<2x128xf32>
    %cst_11 = arith.constant dense<0.000000e+00> : vector<2xf32>
    %15 = vector.multi_reduction <add>, %14, %cst_11 [1] : vector<2x128xf32> to vector<2xf32>
    %16 = vector.shape_cast %15 : vector<2xf32> to vector<2x1xf32>
    %17 = math.log %16 : vector<2x1xf32>
    %18 = arith.addf %11, %17 : vector<2x1xf32>
    %19 = tpu.iota {dimensions = array<i32: 1>} : vector<2x128xi32>
    %c0_12 = arith.constant 0 : index
    %c0_13 = arith.constant 0 : index
    %20 = vector.load %arg4[%c0_12, %c0_13] : memref<2x1xi32, #tpu.memory_space<vmem>>, vector<2x1xi32>
    %21 = vector.broadcast %20 : vector<2x1xi32> to vector<2x128xi32>
    %22 = arith.cmpi eq, %19, %21 : vector<2x128xi32>
    %cst_14 = arith.constant 0.000000e+00 : f32
    %23 = vector.broadcast %cst_14 : f32 to vector<2x128xf32>
    %24 = arith.select %22, %8, %23 : vector<2x128xi1>, vector<2x128xf32>
    %cst_15 = arith.constant dense<0.000000e+00> : vector<2xf32>
    %25 = vector.multi_reduction <add>, %24, %cst_15 [1] : vector<2x128xf32> to vector<2xf32>
    %26 = vector.shape_cast %25 : vector<2xf32> to vector<2x1xf32>
    %27 = arith.subf %18, %26 : vector<2x1xf32>
    %c0_16 = arith.constant 0 : index
    %c0_17 = arith.constant 0 : index
    %28 = vector.load %arg6[%c0_16, %c0_17] : memref<2x1xf32, #tpu.memory_space<vmem>>, vector<2x1xf32>
    tpu.vector_store %arg6[%c0_16, %c0_17], %27 {strides = array<i32>} : memref<2x1xf32, #tpu.memory_space<vmem>>, vector<2x1xf32>,
    return
  }
  func.func @transform_0(%arg0: i32) -> (i32, i32, i32) {
    %c0_i32 = arith.constant 0 : i32
    %c0_i32_0 = arith.constant 0 : i32
    %c0_i32_1 = arith.constant 0 : i32
    return %arg0, %c0_i32, %c0_i32_0 : i32, i32, i32
  }
  func.func @transform_1(%arg0: i32) -> (i32, i32) {
    %c0_i32 = arith.constant 0 : i32
    %c0_i32_0 = arith.constant 0 : i32
    %c0_i32_1 = arith.constant 0 : i32
    return %c0_i32, %c0_i32_0 : i32, i32
  }
  func.func @transform_2(%arg0: i32) -> (i32, i32) {
    %c0_i32 = arith.constant 0 : i32
    %c0_i32_0 = arith.constant 0 : i32
    %c0_i32_1 = arith.constant 0 : i32
    return %c0_i32, %c0_i32_0 : i32, i32
  }
  func.func @transform_3(%arg0: i32) -> (i32, i32) {
    %c0_i32 = arith.constant 0 : i32
    %c0_i32_0 = arith.constant 0 : i32
    return %arg0, %c0_i32 : i32, i32
  }
  func.func @transform_4(%arg0: i32) -> (i32, i32) {
    %c0_i32 = arith.constant 0 : i32
    %c0_i32_0 = arith.constant 0 : i32
    return %arg0, %c0_i32 : i32, i32
  }
  func.func @transform_5(%arg0: i32) -> (i32, i32) {
    %c0_i32 = arith.constant 0 : i32
    %c0_i32_0 = arith.constant 0 : i32
    return %arg0, %c0_i32 : i32, i32
  }
}

</mosaic_0001>

<bundles_post_ra>
// kernel: tpu_custom_call.1
= control target key start
LH: loop header
LB: loop body
LE: loop exit
PB: predicated region body
PF: predicated region fallthrough
CT: control target
= control target key end

     0   :  { %vm239_vm0 = vcmask 1043456   ;;  %v402_v2 = vmov 0.0   ;;  %vm403_vm1 = vmmov 0   ;;  %vm84_vm2 = vcmask 31744   ;;  %s720_s0 = inlined_call_operand.vmem [shape: f32[2,256,4], index: 0, kind: input, shape index: {}]   ;;  %s721_s1 = inlined_call_operand.vmem [shape: f32[4,128], index: 1, kind: input, shape index: {}]   ;;  %s722_s2 = inlined_call_operand.vmem [shape: f32[1,128], index: 2, kind: input, shape index: {}]   ;;  %s723_s3 = inlined_call_operand.vmem [shape: s32[2,1], index: 3, kind: input, shape index: {}]   ;;  %s724_s4 = inlined_call_operand.hbm [shape: f32[2,128], index: 4, kind: output, shape index: {0}]   ;;  %s725_s5 = inlined_call_operand.vmem [shape: f32[2,1], index: 5, kind: output, shape index: {1}]  }
   0x1   :  { %v225_v0 = vld [vmem:[%s721_s1] sm:$0xf]  ;;  %364 = vmatprep.subr.mxu0 %v402_v2  ;;  %366 = vmatprep.mubr.msk.f32.mxu0 %vm403_vm1, %v402_v2  ;;  %v21_v3 = vld [vmem:[%s720_s0 + $0x8] sm:$0xff]  ;;  %v22_v4 = vld [vmem:[%s720_s0 + $0x10] sm:$0xff] }
   0x2   :  { %v20_v1 = vld [vmem:[%s720_s0] sm:$0xff]  ;;  %v23_v5 = vld [vmem:[%s720_s0 + $0x18] sm:$0xff]  ;;  %365 = vmatpush3.msk.msra.mxu0 %vm239_vm0, %v225_v0  ;;  %v86_v7 = vsel %vm84_vm2, %v21_v3, 0.0  ;;  %v88_v8 = vsel %vm84_vm2, %v22_v4, 0.0  ;;  %v25_v12 = vld [vmem:[%s720_s0 + $0x28] sm:$0xff] }
   0x3   :  { %v85_v6 = vsel %vm84_vm2, %v20_v1, 0.0  ;;  %v24_v9 = vld [vmem:[%s720_s0 + $0x20] sm:$0xff]  ;;  %v90_v11 = vsel %vm84_vm2, %v23_v5, 0.0  ;;  %v26_v15 = vld [vmem:[%s720_s0 + $0x30] sm:$0xff]  ;;  %v94_v17 = vsel %vm84_vm2, %v25_v12, 0.0  ;;  %v27_v18 = vld [vmem:[%s720_s0 + $0x38] sm:$0xff] }
   0x4   :  { %v87_v10 = vadd.f32 %v86_v7, %v85_v6  ;;  %v92_v14 = vsel %vm84_vm2, %v24_v9, 0.0  ;;  %v96_v20 = vsel %vm84_vm2, %v26_v15, 0.0  ;;  %v28_v21 = vld [vmem:[%s720_s0 + $0x40] sm:$0xff]  ;;  %v53_v23 = vld [vmem:[%s720_s0 + $0x108] sm:$0xff]  ;;  %v54_v25 = vld [vmem:[%s720_s0 + $0x110] sm:$0xff]  ;;  %v98_v27 = vsel %vm84_vm2, %v27_v18, 0.0 }
   0x5   :  { %v52_v22 = vld [vmem:[%s720_s0 + $0x100] sm:$0xff]  ;;  %v55_v26 = vld [vmem:[%s720_s0 + $0x118] sm:$0xff]  ;;  %v29_v29 = vld [vmem:[%s720_s0 + $0x48] sm:$0xff]  ;;  %v155_v31 = vsel %vm84_vm2, %v53_v23, 0.0  ;;  %v157_v32 = vsel %vm84_vm2, %v54_v25, 0.0  ;;  %v100_v34 = vsel %vm84_vm2, %v28_v21, 0.0 }
   0x6   :  { %v89_v13 = vadd.f32 %v88_v8, %v87_v10  ;;  %v154_v28 = vsel %vm84_vm2, %v52_v22, 0.0  ;;  %v56_v33 = vld [vmem:[%s720_s0 + $0x120] sm:$0xff]  ;;  %v30_v36 = vld [vmem:[%s720_s0 + $0x50] sm:$0xff]  ;;  %v159_v38 = vsel %vm84_vm2, %v55_v26, 0.0  ;;  %v57_v39 = vld [vmem:[%s720_s0 + $0x128] sm:$0xff]  ;;  %v102_v40 = vsel %vm84_vm2, %v29_v29, 0.0 }
   0x7   :  { %v156_v35 = vadd.f32 %v155_v31, %v154_v28  ;;  %v31_v42 = vld [vmem:[%s720_s0 + $0x58] sm:$0xff]  ;;  %v161_v44 = vsel %vm84_vm2, %v56_v33, 0.0  ;;  %v58_v45 = vld [vmem:[%s720_s0 + $0x130] sm:$0xff]  ;;  %v104_v46 = vsel %vm84_vm2, %v30_v36, 0.0  ;;  %v32_v48 = vld [vmem:[%s720_s0 + $0x60] sm:$0xff]  ;;  %v163_v50 = vsel %vm84_vm2, %v57_v39, 0.0 }
   0x8   :  { %v91_v16 = vadd.f32 %v90_v11, %v89_v13  ;;  %v59_v51 = vld [vmem:[%s720_s0 + $0x138] sm:$0xff]  ;;  %v106_v52 = vsel %vm84_vm2, %v31_v42, 0.0  ;;  %v33_v54 = vld [vmem:[%s720_s0 + $0x68] sm:$0xff]  ;;  %v165_v56 = vsel %vm84_vm2, %v58_v45, 0.0  ;;  %v60_v57 = vld [vmem:[%s720_s0 + $0x140] sm:$0xff]  ;;  %v108_v58 = vsel %vm84_vm2, %v32_v48, 0.0 }
   0x9   :  { %v158_v41 = vadd.f32 %v157_v32, %v156_v35  ;;  %v34_v60 = vld [vmem:[%s720_s0 + $0x70] sm:$0xff]  ;;  %v167_v62 = vsel %vm84_vm2, %v59_v51, 0.0 }
   0xa   :  { %v93_v19 = vadd.f32 %v92_v14, %v91_v16 }
   0xb   :  { %v160_v47 = vadd.f32 %v159_v38, %v158_v41 }
   0xc   :  { %v95_v24 = vadd.f32 %v94_v17, %v93_v19 }
   0xd   :  { %v162_v53 = vadd.f32 %v161_v44, %v160_v47 }
   0xe   :  { %v97_v30 = vadd.f32 %v96_v20, %v95_v24 }
   0xf   :  { %v164_v59 = vadd.f32 %v163_v50, %v162_v53 }
  0x10   :  { %v99_v37 = vadd.f32 %v98_v27, %v97_v30 }
  0x12   :  { %v101_v43 = vadd.f32 %v100_v34, %v99_v37 }
  0x14   :  { %v103_v49 = vadd.f32 %v102_v40, %v101_v43 }
  0x16   :  { %v105_v55 = vadd.f32 %v104_v46, %v103_v49 }
  0x18   :  { %v107_v61 = vadd.f32 %v106_v52, %v105_v55 }
  0x19   :  { %11 = vsyncpa [#allocation3], 0  ;;  %v61_v63 = vld [vmem:[%s720_s0 + $0x148] sm:$0xff]  ;;  %v110_v0 = vsel %vm84_vm2, %v33_v54, 0.0  ;;  %v166_v1 = vadd.f32 %v165_v56, %v164_v59  ;;  %v35_v2 = vld [vmem:[%s720_s0 + $0x78] sm:$0xff]  ;;  %v169_v4 = vsel %vm84_vm2, %v60_v57, 0.0 }
  0x1a   :  { %v109_v3 = vadd.f32 %v108_v58, %v107_v61  ;;  %v62_v5 = vld [vmem:[%s720_s0 + $0x150] sm:$0xff]  ;;  %v112_v6 = vsel %vm84_vm2, %v34_v60, 0.0  ;;  %v36_v8 = vld [vmem:[%s720_s0 + $0x80] sm:$0xff]  ;;  %v171_v10 = vsel %vm84_vm2, %v61_v63, 0.0  ;;  %v63_v11 = vld [vmem:[%s720_s0 + $0x158] sm:$0xff]  ;;  %v114_v12 = vsel %vm84_vm2, %v35_v2, 0.0 }
  0x1b   :  { %v168_v7 = vadd.f32 %v167_v62, %v166_v1  ;;  %v37_v14 = vld [vmem:[%s720_s0 + $0x88] sm:$0xff]  ;;  %v173_v16 = vsel %vm84_vm2, %v62_v5, 0.0  ;;  %v64_v17 = vld [vmem:[%s720_s0 + $0x160] sm:$0xff]  ;;  %v116_v18 = vsel %vm84_vm2, %v36_v8, 0.0  ;;  %v38_v20 = vld [vmem:[%s720_s0 + $0x90] sm:$0xff]  ;;  %v175_v22 = vsel %vm84_vm2, %v63_v11, 0.0 }
  0x1c   :  { %v111_v9 = vadd.f32 %v110_v0, %v109_v3  ;;  %v65_v23 = vld [vmem:[%s720_s0 + $0x168] sm:$0xff]  ;;  %v118_v24 = vsel %vm84_vm2, %v37_v14, 0.0  ;;  %v39_v26 = vld [vmem:[%s720_s0 + $0x98] sm:$0xff]  ;;  %v177_v28 = vsel %vm84_vm2, %v64_v17, 0.0  ;;  %v66_v29 = vld [vmem:[%s720_s0 + $0x170] sm:$0xff]  ;;  %v120_v30 = vsel %vm84_vm2, %v38_v20, 0.0 }
  0x1d   :  { %v170_v13 = vadd.f32 %v169_v4, %v168_v7  ;;  %v40_v32 = vld [vmem:[%s720_s0 + $0xa0] sm:$0xff]  ;;  %v179_v34 = vsel %vm84_vm2, %v65_v23, 0.0  ;;  %v67_v35 = vld [vmem:[%s720_s0 + $0x178] sm:$0xff]  ;;  %v122_v36 = vsel %vm84_vm2, %v39_v26, 0.0  ;;  %v41_v38 = vld [vmem:[%s720_s0 + $0xa8] sm:$0xff]  ;;  %v181_v40 = vsel %vm84_vm2, %v66_v29, 0.0 }
  0x1e   :  { %v113_v15 = vadd.f32 %v112_v6, %v111_v9  ;;  %v68_v41 = vld [vmem:[%s720_s0 + $0x180] sm:$0xff]  ;;  %v124_v42 = vsel %vm84_vm2, %v40_v32, 0.0  ;;  %v42_v44 = vld [vmem:[%s720_s0 + $0xb0] sm:$0xff]  ;;  %v183_v46 = vsel %vm84_vm2, %v67_v35, 0.0  ;;  %v69_v47 = vld [vmem:[%s720_s0 + $0x188] sm:$0xff]  ;;  %v126_v48 = vsel %vm84_vm2, %v41_v38, 0.0 }
  0x1f   :  { %v172_v19 = vadd.f32 %v171_v10, %v170_v13  ;;  %v43_v50 = vld [vmem:[%s720_s0 + $0xb8] sm:$0xff]  ;;  %v185_v52 = vsel %vm84_vm2, %v68_v41, 0.0  ;;  %v70_v53 = vld [vmem:[%s720_s0 + $0x190] sm:$0xff]  ;;  %v128_v54 = vsel %vm84_vm2, %v42_v44, 0.0  ;;  %v44_v56 = vld [vmem:[%s720_s0 + $0xc0] sm:$0xff]  ;;  %v187_v58 = vsel %vm84_vm2, %v69_v47, 0.0 }
  0x20   :  { %v115_v21 = vadd.f32 %v114_v12, %v113_v15  ;;  %v71_v59 = vld [vmem:[%s720_s0 + $0x198] sm:$0xff]  ;;  %v130_v60 = vsel %vm84_vm2, %v43_v50, 0.0  ;;  %v45_v62 = vld [vmem:[%s720_s0 + $0xc8] sm:$0xff]  ;;  %v189_v0 = vsel %vm84_vm2, %v70_v53, 0.0  ;;  %v72_v1 = vld [vmem:[%s720_s0 + $0x1a0] sm:$0xff]  ;;  %v132_v2 = vsel %vm84_vm2, %v44_v56, 0.0 }
  0x21   :  { %v174_v25 = vadd.f32 %v173_v16, %v172_v19  ;;  %v46_v4 = vld [vmem:[%s720_s0 + $0xd0] sm:$0xff]  ;;  %v191_v6 = vsel %vm84_vm2, %v71_v59, 0.0  ;;  %v73_v7 = vld [vmem:[%s720_s0 + $0x1a8] sm:$0xff]  ;;  %v134_v8 = vsel %vm84_vm2, %v45_v62, 0.0  ;;  %v47_v10 = vld [vmem:[%s720_s0 + $0xd8] sm:$0xff]  ;;  %v193_v12 = vsel %vm84_vm2, %v72_v1, 0.0 }
  0x22   :  { %v117_v27 = vadd.f32 %v116_v18, %v115_v21  ;;  %v74_v13 = vld [vmem:[%s720_s0 + $0x1b0] sm:$0xff]  ;;  %v136_v14 = vsel %vm84_vm2, %v46_v4, 0.0  ;;  %v48_v16 = vld [vmem:[%s720_s0 + $0xe0] sm:$0xff]  ;;  %v195_v18 = vsel %vm84_vm2, %v73_v7, 0.0  ;;  %v75_v19 = vld [vmem:[%s720_s0 + $0x1b8] sm:$0xff]  ;;  %v138_v20 = vsel %vm84_vm2, %v47_v10, 0.0 }
  0x23   :  { %v176_v31 = vadd.f32 %v175_v22, %v174_v25  ;;  %v49_v22 = vld [vmem:[%s720_s0 + $0xe8] sm:$0xff]  ;;  %v76_v25 = vld [vmem:[%s720_s0 + $0x1c0] sm:$0xff]  ;;  %v140_v26 = vsel %vm84_vm2, %v48_v16, 0.0  ;;  %v83_v59 = vld [vmem:[%s720_s0 + $0x1f8] sm:$0xff]  ;;  %vm235_vm3 = vcmask 1041409   ;;  %vm314_vm4 = vcmask 1041408  }
  0x24   :  { %v119_v33 = vadd.f32 %v118_v24, %v117_v27  ;;  %v197_v24 = vsel %vm84_vm2, %v74_v13, 0.0  ;;  %v142_v32 = vsel %vm84_vm2, %v49_v22, 0.0  ;;  %v80_v47 = vld [vmem:[%s720_s0 + $0x1e0] sm:$0xff] }
  0x25   :  { %v178_v37 = vadd.f32 %v177_v28, %v176_v31  ;;  %v50_v28 = vld [vmem:[%s720_s0 + $0xf0] sm:$0xff]  ;;  %v77_v31 = vld [vmem:[%s720_s0 + $0x1c8] sm:$0xff]  ;;  %v359_v16 = vld [vmem:[%s722_s2] ss:$0 sm:$0xff]  ;;  %s405_s2 = smov [#allocation2]  }
  0x26   :  { %v121_v39 = vadd.f32 %v120_v30, %v119_v33  ;;  %v199_v30 = vsel %vm84_vm2, %v75_v19, 0.0  ;;  %v144_v38 = vsel %vm84_vm2, %v50_v28, 0.0  ;;  %v203_v41 = vsel %vm84_vm2, %v77_v31, 0.0  ;;  %s347_s21 = sshll.u32 %s405_s2, 4  ;;  %s348_s21 = int_to_ptr.vmem [resolvable:$true] %s347_s21 }
  0x27   :  { %v180_v43 = vadd.f32 %v179_v34, %v178_v37  ;;  %v51_v34 = vld [vmem:[%s720_s0 + $0xf8] sm:$0xff]  ;;  %v78_v37 = vld [vmem:[%s720_s0 + $0x1d0] sm:$0xff]  ;;  %p383_p1 = scmp.lt.s32.totalorder %s348_s21, %s348_s21 }
  0x28   :  { %v123_v45 = vadd.f32 %v122_v36, %v121_v39  ;;  %v201_v36 = vsel %vm84_vm2, %v76_v25, 0.0  ;;  %v327_v25 = vlaneseq }
  0x29   :  { %v182_v49 = vadd.f32 %v181_v40, %v180_v43  ;;  %v146_v43 = vsel %vm84_vm2, %v51_v34, 0.0 }
  0x2a   :  { %v125_v51 = vadd.f32 %v124_v42, %v123_v45  ;;  %v79_v42 = vld [vmem:[%s720_s0 + $0x1d8] sm:$0xff] }
  0x2b   :  { %v184_v55 = vadd.f32 %v183_v46, %v182_v49  ;;  %v205_v46 = vsel %vm84_vm2, %v78_v37, 0.0  ;;  %v207_v50 = vsel %vm84_vm2, %v79_v42, 0.0 }
  0x2c   :  { %v127_v57 = vadd.f32 %v126_v48, %v125_v51  ;;  %v81_v51 = vld [vmem:[%s720_s0 + $0x1e8] sm:$0xff] }
  0x2d   :  { %v186_v61 = vadd.f32 %v185_v52, %v184_v55  ;;  %v82_v55 = vld [vmem:[%s720_s0 + $0x1f0] sm:$0xff] }
  0x2e   :  { %v129_v63 = vadd.f32 %v128_v54, %v127_v57  ;;  %v209_v54 = vsel %vm84_vm2, %v80_v47, 0.0 }
  0x2f   :  { %v188_v3 = vadd.f32 %v187_v58, %v186_v61  ;;  %v211_v58 = vsel %vm84_vm2, %v81_v51, 0.0  ;;  %v213_v61 = vsel %vm84_vm2, %v82_v55, 0.0 }
  0x30   :  { %v131_v5 = vadd.f32 %v130_v60, %v129_v63 }
  0x31   :  { %v190_v9 = vadd.f32 %v189_v0, %v188_v3  ;;  %v215_v0 = vsel %vm84_vm2, %v83_v59, 0.0 }
  0x32   :  { %v133_v11 = vadd.f32 %v132_v2, %v131_v5 }
  0x33   :  { %v192_v15 = vadd.f32 %v191_v6, %v190_v9 }
  0x34   :  { %v135_v17 = vadd.f32 %v134_v8, %v133_v11 }
  0x35   :  { %v194_v21 = vadd.f32 %v193_v12, %v192_v15  ;;  %v404_v15 = vmov 0  }
  0x36   :  { %v137_v23 = vadd.f32 %v136_v14, %v135_v17  ;;  %373 = vset.pattern.permute.xlu0 %v404_v15 }
  0x37   :  { %v196_v27 = vadd.f32 %v195_v18, %v194_v21  ;;  %v329_v21 = vld [vmem:[%s723_s3] sm:$0x3]  ;;  %s378_s3 = scalar_lea.vmem %s348_s21, 32 }
  0x38   :  { %v139_v29 = vadd.f32 %v138_v20, %v137_v23  ;;  %p379_p0 = scmp.ne.s32.totalorder %s348_s21, %s378_s3  ;;  %p384_p2 = scmp.lt.s32.totalorder %s378_s3, %s378_s3 }
  0x39   :  { %v198_v33 = vadd.f32 %v197_v24, %v196_v27 }
  0x3a   :  { %v141_v35 = vadd.f32 %v140_v26, %v139_v29  ;;  %v328_v26 = vand.u32 127, %v327_v25  ;;  %p385_p3 = por %p384_p2, %p383_p1 }
  0x3b   :  { %v200_v39 = vadd.f32 %v199_v30, %v198_v33 }
  0x3c   :  { %v143_v40 = vadd.f32 %v142_v32, %v141_v35  ;;  %p386_p4 = pnand %p385_p3, %p379_p0 }
  0x3d   :  { %v202_v44 = vadd.f32 %v201_v36, %v200_v39 }
  0x3e   :  { %v145_v45 = vadd.f32 %v144_v38, %v143_v40 }
  0x3f   :  { %v204_v48 = vadd.f32 %v203_v41, %v202_v44 }
  0x40   :  { %v147_v49 = vadd.f32 %v146_v43, %v145_v45 }
  0x41   :  { %v206_v52 = vadd.f32 %v205_v46, %v204_v48 }
  0x42   :  { %v148_v53 = vrot.slane %v147_v49, 4 }
  0x43   :  { %v208_v56 = vadd.f32 %v207_v50, %v206_v52 }
  0x44   :  { %v149_v57 = vadd.f32 %v148_v53, %v147_v49 }
  0x45   :  { %v210_v60 = vadd.f32 %v209_v54, %v208_v56 }
  0x46   :  { %v150_v62 = vrot.slane %v149_v57, 2 }
  0x47   :  { %v212_v63 = vadd.f32 %v211_v58, %v210_v60 }
  0x48   :  { %v151_v2 = vadd.f32 %v150_v62, %v149_v57 }
  0x49   :  { %v214_v1 = vadd.f32 %v213_v61, %v212_v63 }
  0x4a   :  { %v152_v5 = vrot.slane %v151_v2, 1 }
  0x4b   :  { %v216_v3 = vadd.f32 %v215_v0, %v214_v1 }
  0x4c   :  { %v153_v8 = vadd.f32 %v152_v5, %v151_v2 }
  0x4d   :  { %v217_v4 = vrot.slane %v216_v3, 4 }
  0x4e   :  { %v223_v12 = vmul.f32 0.00390625, %v153_v8 }
  0x4f   :  { %v218_v6 = vadd.f32 %v217_v4, %v216_v3 }
  0x51   :  { %v219_v7 = vrot.slane %v218_v6, 2 }
  0x53   :  { %v220_v9 = vadd.f32 %v219_v7, %v218_v6 }
  0x55   :  { %v221_v10 = vrot.slane %v220_v9, 1 }
  0x57   :  { %v222_v11 = vadd.f32 %v221_v10, %v220_v9 }
  0x59   :  { %v224_v13 = vmul.f32 0.00390625, %v222_v11 }
  0x5b   :  { %v236_v14 = vsel %vm235_vm3, %v224_v13, %v223_v12 }
  0x5c   :  { %367 = vmatmul.mubr.msk.f32.vlgmr.msra.gmra.mrb[0].mxu0 %vm84_vm2, %v236_v14 }
 0x12f   :  { %v309_v17 = vpop.f32.mrb[0].mxu0 }
 0x130   :  { %v310_v18 = vadd.f32 %v359_v16, %v309_v17  ;;  %v368_v19 = vpop.f32.mrb[1].mxu0 }
 0x132   :  { %313 = vst [vmem:[#allocation2] sm:$0x3] %v310_v18  ;;  %v315_v20 = vsel %vm314_vm4, %v310_v18, -inf }
 0x133   :  { %316 = vmax.xlane.f32.xlu0 %v315_v20 }
 0x149   :  { %331 = vperm.xlu0 %373, %v329_v21  }
 0x1c0   :  { %v317_v22 = vpop.xlane.xlu0 %316 }
 0x1c1   :  { %v318_v23 = vsub.f32 %v310_v18, %v317_v22 }
 0x1c3   :  { %v319_v24 = vmul.f32 1.442695, %v318_v23 }
 0x1c5   :  { %374 = vpow2.f32 %v319_v24 }
 0x1c8   :  { %v332_v27 = vpop.permute.xlu0 %331 }
 0x1c9   :  { %vm333_vm5 = vcmp.eq.s32.totalorder %v328_v26, %v332_v27 }
 0x1ca   :  { %v334_v30 = vsel %vm333_vm5, %v310_v18, 0.0 }
 0x1cb   :  { %v335_v31 = vsel %vm314_vm4, %v334_v30, 0.0 }
 0x1cf   :  { %v375_v28 = vpop.eup %374 }
 0x1d0   :  { %v321_v29 = vsel %vm314_vm4, %v375_v28, 0.0 }
 0x1d1   :  { %322 = vadd.xlane.f32.xlu1 %v321_v29 }
 0x1d5   :  { %336 = vadd.xlane.f32.xlu1 %v335_v31 }
 0x1d6   :  { %389 = shalt.err (!%p386_p4)
}
 0x1d7   :  { %s390_s24 = scalar_lea.hbm %s724_s4, 32 }
 0x1d8   :  { %p391_p5 = scmp.ne.s32.totalorder %s724_s4, %s390_s24  ;;  %p394_p6 = scmp.lt.u32.totalorder %s390_s24, %s724_s4 }
 0x1da   :  { %p396_p7 = pnand %p394_p6, %p391_p5 }
 0x1dc   :  { %399 = shalt.err (!%p396_p7)
}
 0x1dd   :  { %350 = dma.vmem_to_hbm [thread:$0]  %s348_s21, 32, %s724_s4, [#allocation3]   ;;  %vm339_vm6 = vcmask 1024  }
 0x25e   :  { %v323_v32 = vpop.xlane.xlu1 %322 }
 0x25f   :  { %376 = vlog2.f32 %v323_v32 }
 0x262   :  { %v337_v36 = vpop.xlane.xlu1 %336 }
 0x269   :  { %v377_v33 = vpop.eup %376 }
 0x26a   :  { %v325_v34 = vmul.f32 0.6931472, %v377_v33 }
 0x26c   :  { %v326_v35 = vadd.f32 %v325_v34, %v317_v22 }
 0x26e   :  { %v338_v37 = vsub.f32 %v326_v35, %v337_v36 }
 0x270   :  { %340 = vst.msk [vmem:[%s725_s5] sm:$0x3] %vm339_vm6, %v338_v37 }
 0x271   :  { %400 = dma.done.wait [#allocation3], 32  }
 0x272   :  { %401 = vsyncadd [#allocation3], 4294967264 }
 0x273   :  { %358 = vsyncpa [#allocation3], 1 }

</bundles_post_ra>
